<compile_context>
chip_gen: v6e
topology: v6e:2x2x1
jax: 0.10.0
libtpu: 0.0.40
codegen_flags: <defaults>
</compile_context>

<pallas_src>
import functools

import jax
import jax.numpy as jnp
from jax.experimental import pallas as pl
from jax.experimental.pallas import tpu as pltpu


def _round_up(x, m):
    return (x + m - 1) // m * m


# ----------------------------- Pallas kernels ------------------------------ #

def stem_pool_kernel(xe_ref, xo_ref, w_ref, bias_ref, o_ref, *,
                     Ho, Wo, Wo_p, KJ, row_chunk, inv_hw):
    """Fused ResNet stem for one image:
    conv7x7/stride2 (7 kernel-row GEMMs over a width-im2col'd, parity-split
    input held in VMEM) + folded frozen BatchNorm2d (scale in weights, shift as
    bias) + ReLU + global average pooling.

      xe_ref : [Ho+3, Wo_p, KJ]  even padded input rows (bf16)
      xo_ref : [Ho+2, Wo_p, KJ]  odd  padded input rows (bf16)
      w_ref  : [7, KJ, C_pad]    per-kernel-row weights (bf16, BN scale folded)
      bias   : [1, C_pad]        BN shift (f32)
      o_ref  : [1, C_pad]        pooled features (f32, lane-dense)
    """
    C_pad = o_ref.shape[-1]
    pooled = jnp.zeros((1, C_pad), jnp.float32)

    # Static chunking over output rows keeps the f32 pre-activation block small
    # (VMEM-bounded even for 224x224 inputs); for the small test it is 1 chunk.
    for c0 in range(0, Ho, row_chunk):
        rows = min(row_chunk, Ho - c0)
        m = rows * Wo_p
        acc = jnp.zeros((m, C_pad), jnp.float32)
        for i in range(7):                       # kernel rows, fully static
            a = i // 2
            src = xe_ref if (i % 2 == 0) else xo_ref   # row 2*ho+i == parity[ho+a]
            slab = src[pl.ds(c0 + a, rows), :, :]      # [rows, Wo_p, KJ], static slice
            slab = slab.reshape(m, KJ)
            acc += jnp.dot(slab, w_ref[i], preferred_element_type=jnp.float32)
        y = jnp.maximum(acc + bias_ref[...], 0.0)      # f32 epilogue
        if Wo_p != Wo:                                  # static: mask padded wo rows
            wo = jax.lax.broadcasted_iota(jnp.int32, (m, 1), 0) % Wo_p
            y = jnp.where(wo < Wo, y, 0.0)
        pooled = pooled + jnp.sum(y, axis=0, keepdims=True)

    o_ref[...] = pooled * inv_hw


def head_kernel(x_ref, w_ref, b_ref, gamma_ref, beta_ref, o_ref):
    """flatten (x.view(B, -1)) + fc + BatchNorm1d (training-mode batch stats,
    biased variance, eps=1e-5).  Matmul operands bf16, f32 accumulation and
    epilogue.  Padded columns are exactly zero and stay zero."""
    y = jnp.dot(x_ref[...].astype(jnp.bfloat16), w_ref[...],
                preferred_element_type=jnp.float32) + b_ref[...]
    mu = jnp.mean(y, axis=0, keepdims=True)
    var = jnp.mean((y - mu) ** 2, axis=0, keepdims=True)
    o_ref[...] = (y - mu) * jax.lax.rsqrt(var + 1e-5) * gamma_ref[...] + beta_ref[...]


# ------------------------------- JAX glue ---------------------------------- #

def _prep_stem_input(x, Ho, Wo, Wo_p, KJ):
    """NCHW -> width-only im2col, parity-split over padded rows (bf16).

    xcol[b, r, wo, j*C+c] = x_pad[b, r, 2*wo+j, c];  xe takes even rows r, xo
    odd rows r, so the kernel only needs stride-1, statically-offset row bands.
    HBM traffic is ~input-sized (no [HW, 7*7*C] patch matrix is materialized)."""
    B, C, H, W = x.shape
    x_cl = jnp.transpose(x, (0, 2, 3, 1))                          # [B,H,W,C]
    x_pad = jnp.pad(x_cl, ((0, 0), (3, 3), (3, 3), (0, 0)))        # [B,H+6,W+6,C]
    cols = jnp.stack([x_pad[:, :, j:j + 2 * Wo:2, :] for j in range(7)], axis=3)
    cols = cols.reshape(B, H + 6, Wo, 7 * C)                       # [B,Hp,Wo,7C]
    cols = jnp.pad(cols, ((0, 0), (0, 0), (0, Wo_p - Wo), (0, KJ - 7 * C)))
    xe = cols[:, 0:2 * Ho + 5:2]                                   # [B,Ho+3,Wo_p,KJ]
    xo = cols[:, 1:2 * Ho + 4:2]                                   # [B,Ho+2,Wo_p,KJ]
    return xe.astype(jnp.bfloat16), xo.astype(jnp.bfloat16)


@functools.partial(jax.jit, static_argnames=("embed_size", "row_chunk"))
def encoder_cnn_forward(x, params, *, embed_size, row_chunk=64):
    """Forward pass of EncoderCNN on NCHW input x."""
    stem_w = params["stem_w"]          # [7, KJ, C_pad] bf16 (BN2 scale folded in)
    stem_bias = params["stem_bias"]    # [1, C_pad]   f32  (BN2 shift)
    fc_w = params["fc_w"]              # [C_pad, E_pad] bf16
    fc_b = params["fc_b"]              # [1, E_pad] f32
    bn1_gamma = params["bn1_gamma"]    # [1, E_pad]
    bn1_beta = params["bn1_beta"]      # [1, E_pad]

    _, KJ, C_pad = stem_w.shape
    E_pad = fc_w.shape[1]

    B, _, H, W = x.shape
    Ho = (H + 2 * 3 - 7) // 2 + 1
    Wo = (W + 2 * 3 - 7) // 2 + 1
    Wo_p = _round_up(Wo, 8)
    He, Hodd = Ho + 3, Ho + 2

    xe, xo = _prep_stem_input(x, Ho, Wo, Wo_p, KJ)

    # --- fused stem: conv-as-GEMMs + frozen BN + ReLU + global average pool ---
    kern = functools.partial(stem_pool_kernel, Ho=Ho, Wo=Wo, Wo_p=Wo_p, KJ=KJ,
                             row_chunk=min(row_chunk, Ho), inv_hw=1.0 / (Ho * Wo))
    pooled = pl.pallas_call(
        kern,
        out_shape=jax.ShapeDtypeStruct((B, 1, C_pad), jnp.float32),
        grid=(B,),
        in_specs=[
            pl.BlockSpec((None, He, Wo_p, KJ), lambda b: (b, 0, 0, 0)),
            pl.BlockSpec((None, Hodd, Wo_p, KJ), lambda b: (b, 0, 0, 0)),
            pl.BlockSpec((7, KJ, C_pad), lambda b: (0, 0, 0)),   # weights resident
            pl.BlockSpec((1, C_pad), lambda b: (0, 0)),
        ],
        out_specs=pl.BlockSpec((None, 1, C_pad), lambda b: (b, 0, 0)),
        compiler_params=pltpu.CompilerParams(
            dimension_semantics=("parallel",)),
    )(xe, xo, stem_w, stem_bias)
    pooled = pooled.reshape(B, C_pad)                    # tiny [B, C_pad]

    # --- head: flatten + Linear + BatchNorm1d (lane-dense, everything tiny) ---
    vmem = pl.BlockSpec(memory_space=pltpu.MemorySpace.VMEM)
    out_pad = pl.pallas_call(
        head_kernel,
        out_shape=jax.ShapeDtypeStruct((B, E_pad), jnp.float32),
        in_specs=[vmem, vmem, vmem, vmem, vmem],
        out_specs=vmem,
    )(pooled, fc_w, fc_b, bn1_gamma, bn1_beta)
    return out_pad[:, :embed_size]


def init_params(key, c_in=3, c_stem=64, embed_size=32):
    """Deterministic synthetic parameters, pre-padded/folded for the kernels.
    Shapes follow the torch module (the 2048-wide resnet feature dim is shrunk
    to c_stem for the small test)."""
    KJ = _round_up(7 * c_in, 16)         # 21 -> 32 (per-kernel-row contraction dim)
    C_pad = _round_up(c_stem, 128)       # 64 -> 128
    E_pad = _round_up(embed_size, 128)   # 32 -> 128

    ks = jax.random.split(key, 8)
    # stem conv weight, torch layout [C_out, C_in, 7, 7]
    conv_w = jax.random.normal(ks[0], (c_stem, c_in, 7, 7), jnp.float32) * 0.05
    # frozen (pretrained, eval-mode) BatchNorm2d -> scale/shift; fold scale into W
    g2 = 0.5 + jax.random.uniform(ks[1], (c_stem,), jnp.float32)
    b2 = jax.random.normal(ks[2], (c_stem,), jnp.float32) * 0.1
    rm = jax.random.normal(ks[3], (c_stem,), jnp.float32) * 0.1
    rv = 0.5 + jax.random.uniform(ks[4], (c_stem,), jnp.float32)
    scale2 = g2 / jnp.sqrt(rv + 1e-5)
    shift2 = b2 - rm * scale2
    w_fold = conv_w * scale2[:, None, None, None]                        # [C_out,C,7,7]
    # per-kernel-row GEMM layout: [i, j*C+c, c_out], matching xcol k-index j*C+c
    w_rows = w_fold.transpose(2, 3, 1, 0).reshape(7, 7 * c_in, c_stem)
    stem_w = jnp.zeros((7, KJ, C_pad), jnp.float32).at[:, :7 * c_in, :c_stem].set(w_rows)
    stem_bias = jnp.zeros((1, C_pad), jnp.float32).at[0, :c_stem].set(shift2)

    # fc: Linear(c_stem, embed_size); torch weight is [E, F] -> stored as [F, E]
    fc_w = jax.random.normal(ks[5], (c_stem, embed_size), jnp.float32) / jnp.sqrt(c_stem)
    fc_b = jax.random.normal(ks[6], (embed_size,), jnp.float32) * 0.01
    bn1_gamma = 0.5 + jax.random.uniform(ks[7], (embed_size,), jnp.float32)
    bn1_beta = jnp.linspace(-0.1, 0.1, embed_size, dtype=jnp.float32)

    fc_w_p = jnp.zeros((C_pad, E_pad), jnp.float32).at[:c_stem, :embed_size].set(fc_w)
    fc_b_p = jnp.zeros((1, E_pad), jnp.float32).at[0, :embed_size].set(fc_b)
    g_p = jnp.zeros((1, E_pad), jnp.float32).at[0, :embed_size].set(bn1_gamma)
    beta_p = jnp.zeros((1, E_pad), jnp.float32).at[0, :embed_size].set(bn1_beta)

    return {
        "stem_w": stem_w.astype(jnp.bfloat16),   # bf16 MXU operand (f32 accumulation)
        "stem_bias": stem_bias,
        "fc_w": fc_w_p.astype(jnp.bfloat16),
        "fc_b": fc_b_p,
        "bn1_gamma": g_p,
        "bn1_beta": beta_p,
    }


if __name__ == "__main__":
    key = jax.random.PRNGKey(0)
    k_x, k_p = jax.random.split(key)

    B, C_in, H, W = 2, 3, 16, 16
    embed_size = 32
    x = jax.random.normal(k_x, (B, C_in, H, W), jnp.float32)   # NCHW, like PyTorch
    params = init_params(k_p, c_in=C_in, c_stem=64, embed_size=embed_size)

    out = encoder_cnn_forward(x, params, embed_size=embed_size)
    out = jax.block_until_ready(out)

    assert out.shape == (B, embed_size), out.shape
    assert bool(jnp.all(jnp.isfinite(out)))
    print("KERNEL_OK")
</pallas_src>

<mosaic_0001>
module attributes {stable_mosaic.version = 11 : i64} {
  func.func @head_kernel(%arg0: memref<2x128xf32, #tpu.memory_space<vmem>>, %arg1: memref<128x128xbf16, #tpu.memory_space<vmem>>, %arg2: memref<1x128xf32, #tpu.memory_space<vmem>>, %arg3: memref<1x128xf32, #tpu.memory_space<vmem>>, %arg4: memref<1x128xf32, #tpu.memory_space<vmem>>, %arg5: memref<2x128xf32, #tpu.memory_space<vmem>>) attributes {dimension_semantics = [], scalar_prefetch = 0 : i64, scratch_operands = 0 : i64, tpu.core_type = #tpu.core_type<tc>} {
    %c0 = arith.constant 0 : index
    %c0_0 = arith.constant 0 : index
    %0 = vector.load %arg0[%c0, %c0_0] : memref<2x128xf32, #tpu.memory_space<vmem>>, vector<2x128xf32>
    %1 = arith.truncf %0 : vector<2x128xf32> to vector<2x128xbf16>
    %c0_1 = arith.constant 0 : index
    %c0_2 = arith.constant 0 : index
    %2 = vector.load %arg1[%c0_1, %c0_2] : memref<128x128xbf16, #tpu.memory_space<vmem>>, vector<128x128xbf16>
    %cst = arith.constant dense<0.000000e+00> : vector<2x128xf32>
    %3 = tpu.matmul %1, %2, %cst {dimension_numbers = #tpu.dot_dimension_numbers<[1], [0], [0], [1], [0, 0, 1, 1], [], []>} : vector<2x128xbf16>, vector<128x128xbf16>, vector<2x128xf32> -> vector<2x128xf32>
    %c0_3 = arith.constant 0 : index
    %c0_4 = arith.constant 0 : index
    %4 = vector.load %arg2[%c0_3, %c0_4] : memref<1x128xf32, #tpu.memory_space<vmem>>, vector<1x128xf32>
    %5 = vector.broadcast %4 : vector<1x128xf32> to vector<2x128xf32>
    %6 = arith.addf %3, %5 : vector<2x128xf32>
    %cst_5 = arith.constant dense<0.000000e+00> : vector<128xf32>
    %7 = vector.multi_reduction <add>, %6, %cst_5 [0] : vector<2x128xf32> to vector<128xf32>
    %8 = vector.shape_cast %7 : vector<128xf32> to vector<1x128xf32>
    %cst_6 = arith.constant 2.000000e+00 : f32
    %9 = vector.broadcast %cst_6 : f32 to vector<1x128xf32>
    %10 = arith.divf %8, %9 : vector<1x128xf32>
    %11 = vector.broadcast %10 : vector<1x128xf32> to vector<2x128xf32>
    %12 = arith.subf %6, %11 : vector<2x128xf32>
    %13 = arith.mulf %12, %12 : vector<2x128xf32>
    %cst_7 = arith.constant dense<0.000000e+00> : vector<128xf32>
    %14 = vector.multi_reduction <add>, %13, %cst_7 [0] : vector<2x128xf32> to vector<128xf32>
    %15 = vector.shape_cast %14 : vector<128xf32> to vector<1x128xf32>
    %cst_8 = arith.constant 2.000000e+00 : f32
    %16 = vector.broadcast %cst_8 : f32 to vector<1x128xf32>
    %17 = arith.divf %15, %16 : vector<1x128xf32>
    %18 = vector.broadcast %10 : vector<1x128xf32> to vector<2x128xf32>
    %19 = arith.subf %6, %18 : vector<2x128xf32>
    %cst_9 = arith.constant 9.99999974E-6 : f32
    %20 = vector.broadcast %cst_9 : f32 to vector<1x128xf32>
    %21 = arith.addf %17, %20 : vector<1x128xf32>
    %22 = math.rsqrt %21 : vector<1x128xf32>
    %23 = vector.broadcast %22 : vector<1x128xf32> to vector<2x128xf32>
    %24 = arith.mulf %19, %23 : vector<2x128xf32>
    %c0_10 = arith.constant 0 : index
    %c0_11 = arith.constant 0 : index
    %25 = vector.load %arg3[%c0_10, %c0_11] : memref<1x128xf32, #tpu.memory_space<vmem>>, vector<1x128xf32>
    %26 = vector.broadcast %25 : vector<1x128xf32> to vector<2x128xf32>
    %27 = arith.mulf %24, %26 : vector<2x128xf32>
    %c0_12 = arith.constant 0 : index
    %c0_13 = arith.constant 0 : index
    %28 = vector.load %arg4[%c0_12, %c0_13] : memref<1x128xf32, #tpu.memory_space<vmem>>, vector<1x128xf32>
    %29 = vector.broadcast %28 : vector<1x128xf32> to vector<2x128xf32>
    %30 = arith.addf %27, %29 : vector<2x128xf32>
    %c0_14 = arith.constant 0 : index
    %c0_15 = arith.constant 0 : index
    %31 = vector.load %arg5[%c0_14, %c0_15] : memref<2x128xf32, #tpu.memory_space<vmem>>, vector<2x128xf32>
    tpu.vector_store %arg5[%c0_14, %c0_15], %30 {strides = array<i32>} : memref<2x128xf32, #tpu.memory_space<vmem>>, vector<2x128xf32>,
    return
  }
}

module attributes {stable_mosaic.version = 11 : i64} {
  func.func @stem_pool_kernel(%arg0: i32, %arg1: memref<1x11x8x32xbf16, #tpu.memory_space<vmem>>, %arg2: memref<1x10x8x32xbf16, #tpu.memory_space<vmem>>, %arg3: memref<7x32x128xbf16, #tpu.memory_space<vmem>>, %arg4: memref<1x128xf32, #tpu.memory_space<vmem>>, %arg5: memref<1x1x128xf32, #tpu.memory_space<vmem>>) attributes {dimension_semantics = [#tpu.dimension_semantics<parallel>], iteration_bounds = array<i64: 2>, scalar_prefetch = 0 : i64, scratch_operands = 0 : i64, tpu.core_type = #tpu.core_type<tc>, window_params = [{transform_indices = @transform_0, window_bounds = array<i64: 1, 11, 8, 32>}, {transform_indices = @transform_1, window_bounds = array<i64: 1, 10, 8, 32>}, {pipeline_mode = #tpu.pipeline_mode<synchronous>, transform_indices = @transform_2, window_bounds = array<i64: 7, 32, 128>}, {pipeline_mode = #tpu.pipeline_mode<synchronous>, transform_indices = @transform_3, window_bounds = array<i64: 1, 128>}, {transform_indices = @transform_4, window_bounds = array<i64: 1, 1, 128>}]} {
    %cst = arith.constant 0.000000e+00 : f32
    %0 = vector.broadcast %cst : f32 to vector<1x128xf32>
    %cst_0 = arith.constant 0.000000e+00 : f32
    %1 = vector.broadcast %cst_0 : f32 to vector<64x128xf32>
    %c0 = arith.constant 0 : index
    %c0_1 = arith.constant 0 : index
    %c0_2 = arith.constant 0 : index
    %c0_3 = arith.constant 0 : index
    %2 = vector.load %arg1[%c0, %c0_1, %c0_2, %c0_3] : memref<1x11x8x32xbf16, #tpu.memory_space<vmem>>, vector<1x8x8x32xbf16>
    %3 = vector.shape_cast %2 : vector<1x8x8x32xbf16> to vector<8x8x32xbf16>
    %4 = vector.shape_cast %3 : vector<8x8x32xbf16> to vector<64x32xbf16>
    %c0_4 = arith.constant 0 : index
    %c0_5 = arith.constant 0 : index
    %c0_6 = arith.constant 0 : index
    %5 = vector.load %arg3[%c0_4, %c0_5, %c0_6] : memref<7x32x128xbf16, #tpu.memory_space<vmem>>, vector<1x32x128xbf16>
    %6 = vector.shape_cast %5 : vector<1x32x128xbf16> to vector<32x128xbf16>
    %cst_7 = arith.constant dense<0.000000e+00> : vector<64x128xf32>
    %7 = tpu.matmul %4, %6, %cst_7 {dimension_numbers = #tpu.dot_dimension_numbers<[1], [0], [0], [1], [0, 0, 1, 1], [], []>} : vector<64x32xbf16>, vector<32x128xbf16>, vector<64x128xf32> -> vector<64x128xf32>
    %8 = arith.addf %1, %7 : vector<64x128xf32>
    %c0_8 = arith.constant 0 : index
    %c0_9 = arith.constant 0 : index
    %c0_10 = arith.constant 0 : index
    %c0_11 = arith.constant 0 : index
    %9 = vector.load %arg2[%c0_8, %c0_9, %c0_10, %c0_11] : memref<1x10x8x32xbf16, #tpu.memory_space<vmem>>, vector<1x8x8x32xbf16>
    %10 = vector.shape_cast %9 : vector<1x8x8x32xbf16> to vector<8x8x32xbf16>
    %11 = vector.shape_cast %10 : vector<8x8x32xbf16> to vector<64x32xbf16>
    %c1 = arith.constant 1 : index
    %c0_12 = arith.constant 0 : index
    %c0_13 = arith.constant 0 : index
    %12 = vector.load %arg3[%c1, %c0_12, %c0_13] : memref<7x32x128xbf16, #tpu.memory_space<vmem>>, vector<1x32x128xbf16>
    %13 = vector.shape_cast %12 : vector<1x32x128xbf16> to vector<32x128xbf16>
    %cst_14 = arith.constant dense<0.000000e+00> : vector<64x128xf32>
    %14 = tpu.matmul %11, %13, %cst_14 {dimension_numbers = #tpu.dot_dimension_numbers<[1], [0], [0], [1], [0, 0, 1, 1], [], []>} : vector<64x32xbf16>, vector<32x128xbf16>, vector<64x128xf32> -> vector<64x128xf32>
    %15 = arith.addf %8, %14 : vector<64x128xf32>
    %c0_15 = arith.constant 0 : index
    %c1_16 = arith.constant 1 : index
    %c0_17 = arith.constant 0 : index
    %c0_18 = arith.constant 0 : index
    %16 = vector.load %arg1[%c0_15, %c1_16, %c0_17, %c0_18] : memref<1x11x8x32xbf16, #tpu.memory_space<vmem>>, vector<1x8x8x32xbf16>
    %17 = vector.shape_cast %16 : vector<1x8x8x32xbf16> to vector<8x8x32xbf16>
    %18 = vector.shape_cast %17 : vector<8x8x32xbf16> to vector<64x32xbf16>
    %c2 = arith.constant 2 : index
    %c0_19 = arith.constant 0 : index
    %c0_20 = arith.constant 0 : index
    %19 = vector.load %arg3[%c2, %c0_19, %c0_20] : memref<7x32x128xbf16, #tpu.memory_space<vmem>>, vector<1x32x128xbf16>
    %20 = vector.shape_cast %19 : vector<1x32x128xbf16> to vector<32x128xbf16>
    %cst_21 = arith.constant dense<0.000000e+00> : vector<64x128xf32>
    %21 = tpu.matmul %18, %20, %cst_21 {dimension_numbers = #tpu.dot_dimension_numbers<[1], [0], [0], [1], [0, 0, 1, 1], [], []>} : vector<64x32xbf16>, vector<32x128xbf16>, vector<64x128xf32> -> vector<64x128xf32>
    %22 = arith.addf %15, %21 : vector<64x128xf32>
    %c0_22 = arith.constant 0 : index
    %c1_23 = arith.constant 1 : index
    %c0_24 = arith.constant 0 : index
    %c0_25 = arith.constant 0 : index
    %23 = vector.load %arg2[%c0_22, %c1_23, %c0_24, %c0_25] : memref<1x10x8x32xbf16, #tpu.memory_space<vmem>>, vector<1x8x8x32xbf16>
    %24 = vector.shape_cast %23 : vector<1x8x8x32xbf16> to vector<8x8x32xbf16>
    %25 = vector.shape_cast %24 : vector<8x8x32xbf16> to vector<64x32xbf16>
    %c3 = arith.constant 3 : index
    %c0_26 = arith.constant 0 : index
    %c0_27 = arith.constant 0 : index
    %26 = vector.load %arg3[%c3, %c0_26, %c0_27] : memref<7x32x128xbf16, #tpu.memory_space<vmem>>, vector<1x32x128xbf16>
    %27 = vector.shape_cast %26 : vector<1x32x128xbf16> to vector<32x128xbf16>
    %cst_28 = arith.constant dense<0.000000e+00> : vector<64x128xf32>
    %28 = tpu.matmul %25, %27, %cst_28 {dimension_numbers = #tpu.dot_dimension_numbers<[1], [0], [0], [1], [0, 0, 1, 1], [], []>} : vector<64x32xbf16>, vector<32x128xbf16>, vector<64x128xf32> -> vector<64x128xf32>
    %29 = arith.addf %22, %28 : vector<64x128xf32>
    %c0_29 = arith.constant 0 : index
    %c2_30 = arith.constant 2 : index
    %c0_31 = arith.constant 0 : index
    %c0_32 = arith.constant 0 : index
    %30 = vector.load %arg1[%c0_29, %c2_30, %c0_31, %c0_32] : memref<1x11x8x32xbf16, #tpu.memory_space<vmem>>, vector<1x8x8x32xbf16>
    %31 = vector.shape_cast %30 : vector<1x8x8x32xbf16> to vector<8x8x32xbf16>
    %32 = vector.shape_cast %31 : vector<8x8x32xbf16> to vector<64x32xbf16>
    %c4 = arith.constant 4 : index
    %c0_33 = arith.constant 0 : index
    %c0_34 = arith.constant 0 : index
    %33 = vector.load %arg3[%c4, %c0_33, %c0_34] : memref<7x32x128xbf16, #tpu.memory_space<vmem>>, vector<1x32x128xbf16>
    %34 = vector.shape_cast %33 : vector<1x32x128xbf16> to vector<32x128xbf16>
    %cst_35 = arith.constant dense<0.000000e+00> : vector<64x128xf32>
    %35 = tpu.matmul %32, %34, %cst_35 {dimension_numbers = #tpu.dot_dimension_numbers<[1], [0], [0], [1], [0, 0, 1, 1], [], []>} : vector<64x32xbf16>, vector<32x128xbf16>, vector<64x128xf32> -> vector<64x128xf32>
    %36 = arith.addf %29, %35 : vector<64x128xf32>
    %c0_36 = arith.constant 0 : index
    %c2_37 = arith.constant 2 : index
    %c0_38 = arith.constant 0 : index
    %c0_39 = arith.constant 0 : index
    %37 = vector.load %arg2[%c0_36, %c2_37, %c0_38, %c0_39] : memref<1x10x8x32xbf16, #tpu.memory_space<vmem>>, vector<1x8x8x32xbf16>
    %38 = vector.shape_cast %37 : vector<1x8x8x32xbf16> to vector<8x8x32xbf16>
    %39 = vector.shape_cast %38 : vector<8x8x32xbf16> to vector<64x32xbf16>
    %c5 = arith.constant 5 : index
    %c0_40 = arith.constant 0 : index
    %c0_41 = arith.constant 0 : index
    %40 = vector.load %arg3[%c5, %c0_40, %c0_41] : memref<7x32x128xbf16, #tpu.memory_space<vmem>>, vector<1x32x128xbf16>
    %41 = vector.shape_cast %40 : vector<1x32x128xbf16> to vector<32x128xbf16>
    %cst_42 = arith.constant dense<0.000000e+00> : vector<64x128xf32>
    %42 = tpu.matmul %39, %41, %cst_42 {dimension_numbers = #tpu.dot_dimension_numbers<[1], [0], [0], [1], [0, 0, 1, 1], [], []>} : vector<64x32xbf16>, vector<32x128xbf16>, vector<64x128xf32> -> vector<64x128xf32>
    %43 = arith.addf %36, %42 : vector<64x128xf32>
    %c0_43 = arith.constant 0 : index
    %c3_44 = arith.constant 3 : index
    %c0_45 = arith.constant 0 : index
    %c0_46 = arith.constant 0 : index
    %44 = vector.load %arg1[%c0_43, %c3_44, %c0_45, %c0_46] : memref<1x11x8x32xbf16, #tpu.memory_space<vmem>>, vector<1x8x8x32xbf16>
    %45 = vector.shape_cast %44 : vector<1x8x8x32xbf16> to vector<8x8x32xbf16>
    %46 = vector.shape_cast %45 : vector<8x8x32xbf16> to vector<64x32xbf16>
    %c6 = arith.constant 6 : index
    %c0_47 = arith.constant 0 : index
    %c0_48 = arith.constant 0 : index
    %47 = vector.load %arg3[%c6, %c0_47, %c0_48] : memref<7x32x128xbf16, #tpu.memory_space<vmem>>, vector<1x32x128xbf16>
    %48 = vector.shape_cast %47 : vector<1x32x128xbf16> to vector<32x128xbf16>
    %cst_49 = arith.constant dense<0.000000e+00> : vector<64x128xf32>
    %49 = tpu.matmul %46, %48, %cst_49 {dimension_numbers = #tpu.dot_dimension_numbers<[1], [0], [0], [1], [0, 0, 1, 1], [], []>} : vector<64x32xbf16>, vector<32x128xbf16>, vector<64x128xf32> -> vector<64x128xf32>
    %50 = arith.addf %43, %49 : vector<64x128xf32>
    %c0_50 = arith.constant 0 : index
    %c0_51 = arith.constant 0 : index
    %51 = vector.load %arg4[%c0_50, %c0_51] : memref<1x128xf32, #tpu.memory_space<vmem>>, vector<1x128xf32>
    %52 = vector.broadcast %51 : vector<1x128xf32> to vector<64x128xf32>
    %53 = arith.addf %50, %52 : vector<64x128xf32>
    %cst_52 = arith.constant 0.000000e+00 : f32
    %54 = vector.broadcast %cst_52 : f32 to vector<64x128xf32>
    %55 = arith.maximumf %53, %54 : vector<64x128xf32>
    %cst_53 = arith.constant dense<0.000000e+00> : vector<128xf32>
    %56 = vector.multi_reduction <add>, %55, %cst_53 [0] : vector<64x128xf32> to vector<128xf32>
    %57 = vector.shape_cast %56 : vector<128xf32> to vector<1x128xf32>
    %58 = arith.addf %0, %57 : vector<1x128xf32>
    %cst_54 = arith.constant 1.562500e-02 : f32
    %59 = vector.broadcast %cst_54 : f32 to vector<1x128xf32>
    %60 = arith.mulf %58, %59 : vector<1x128xf32>
    %c0_55 = arith.constant 0 : index
    %c0_56 = arith.constant 0 : index
    %c0_57 = arith.constant 0 : index
    %61 = vector.load %arg5[%c0_55, %c0_56, %c0_57] : memref<1x1x128xf32, #tpu.memory_space<vmem>>, vector<1x1x128xf32>
    %62 = vector.shape_cast %61 : vector<1x1x128xf32> to vector<1x128xf32>
    %63 = vector.shape_cast %60 : vector<1x128xf32> to vector<1x1x128xf32>
    tpu.vector_store %arg5[%c0_55, %c0_56, %c0_57], %63 {strides = array<i32>} : memref<1x1x128xf32, #tpu.memory_space<vmem>>, vector<1x1x128xf32>,
    return
  }
  func.func @transform_0(%arg0: i32) -> (i32, i32, i32, i32) {
    %c0_i32 = arith.constant 0 : i32
    %c0_i32_0 = arith.constant 0 : i32
    %c0_i32_1 = arith.constant 0 : i32
    %c0_i32_2 = arith.constant 0 : i32
    return %arg0, %c0_i32, %c0_i32_0, %c0_i32_1 : i32, i32, i32, i32
  }
  func.func @transform_1(%arg0: i32) -> (i32, i32, i32, i32) {
    %c0_i32 = arith.constant 0 : i32
    %c0_i32_0 = arith.constant 0 : i32
    %c0_i32_1 = arith.constant 0 : i32
    %c0_i32_2 = arith.constant 0 : i32
    return %arg0, %c0_i32, %c0_i32_0, %c0_i32_1 : i32, i32, i32, i32
  }
  func.func @transform_2(%arg0: i32) -> (i32, i32, i32) {
    %c0_i32 = arith.constant 0 : i32
    %c0_i32_0 = arith.constant 0 : i32
    %c0_i32_1 = arith.constant 0 : i32
    %c0_i32_2 = arith.constant 0 : i32
    return %c0_i32, %c0_i32_0, %c0_i32_1 : i32, i32, i32
  }
  func.func @transform_3(%arg0: i32) -> (i32, i32) {
    %c0_i32 = arith.constant 0 : i32
    %c0_i32_0 = arith.constant 0 : i32
    %c0_i32_1 = arith.constant 0 : i32
    return %c0_i32, %c0_i32_0 : i32, i32
  }
  func.func @transform_4(%arg0: i32) -> (i32, i32, i32) {
    %c0_i32 = arith.constant 0 : i32
    %c0_i32_0 = arith.constant 0 : i32
    %c0_i32_1 = arith.constant 0 : i32
    return %arg0, %c0_i32, %c0_i32_0 : i32, i32, i32
  }
}

</mosaic_0001>

<bundles_post_ra>
// kernel: encoder_cnn_forward.3
= control target key start
LH: loop header
LB: loop body
LE: loop exit
PB: predicated region body
PF: predicated region fallthrough
CT: control target
= control target key end

     0   :  { %v264_v1 = vmov 0.0   ;;  %vm265_vm0 = vmmov 0   ;;  %s336_s0 = inlined_call_operand.vmem [shape: f32[2,128], index: 0, kind: input, shape index: {}]   ;;  %s337_s1 = inlined_call_operand.vmem [shape: bf16[128,128], index: 1, kind: input, shape index: {}]   ;;  %s338_s2 = inlined_call_operand.vmem [shape: f32[1,128], index: 2, kind: input, shape index: {}]   ;;  %s339_s3 = inlined_call_operand.vmem [shape: f32[1,128], index: 3, kind: input, shape index: {}]   ;;  %s340_s4 = inlined_call_operand.vmem [shape: f32[1,128], index: 4, kind: input, shape index: {}]   ;;  %s341_s5 = inlined_call_operand.hbm [shape: f32[2,128], index: 5, kind: output, shape index: {}]  }
   0x1   :  { %v232_v0 = vld [vmem:[%s337_s1 + $0x38] sm:$0xff]   ;;  %209 = vmatprep.subr.bf16.mxu0 %v264_v1  ;;  %v233_v2 = vld [vmem:[%s337_s1 + $0x30] sm:$0xff]   ;;  %225 = vmatprep.mubr.msk.bf16.mxu0 %vm265_vm0, %v264_v1  ;;  %v234_v3 = vld [vmem:[%s337_s1 + $0x28] sm:$0xff]  }
   0x2   :  { %210 = vmatpush3.bf16.msra.mxu0 %v232_v0 }
   0x3   :  { %211 = vmatprep.subr.bf16.mxu0 %v264_v1 }
   0x6   :  { %212 = vmatpush3.bf16.msra.mxu0 %v233_v2 }
   0x7   :  { %213 = vmatprep.subr.bf16.mxu0 %v264_v1 }
   0x8   :  { %10 = vsyncpa [#allocation3], 0  ;;  %v235_v4 = vld [vmem:[%s337_s1 + $0x20] sm:$0xff]   ;;  %v236_v5 = vld [vmem:[%s337_s1 + $0x18] sm:$0xff]   ;;  %vm135_vm1 = vcmask 1041408   ;;  %s266_s14 = smov [#allocation2]  }
   0x9   :  { %v237_v6 = vld [vmem:[%s337_s1 + $0x10] sm:$0xff]   ;;  %v238_v7 = vld [vmem:[%s337_s1 + $0x8] sm:$0xff]   ;;  %v239_v8 = vld [vmem:[%s337_s1] sm:$0xff]   ;;  %s181_s15 = sshll.u32 %s266_s14, 4  ;;  %s182_s15 = int_to_ptr.vmem [resolvable:$true] %s181_s15 }
   0xa   :  { %214 = vmatpush3.bf16.msra.mxu0 %v234_v3  ;;  %v22_v9 = vld [vmem:[%s336_s0] sm:$0x3]  ;;  %s242_s16 = scalar_lea.vmem %s182_s15, 32  ;;  %p247_p1 = scmp.lt.s32.totalorder %s182_s15, %s182_s15 }
   0xb   :  { %215 = vmatprep.subr.bf16.mxu0 %v264_v1  ;;  %v23_v10 = vpack.c.bf16 %v22_v9, %v22_v9  ;;  %v189_v11 = vld [vmem:[%s338_s2] ss:$0 sm:$0xff]  ;;  %p243_p0 = scmp.ne.s32.totalorder %s182_s15, %s242_s16  ;;  %p248_p2 = scmp.lt.s32.totalorder %s242_s16, %s242_s16 }
   0xc   :  { %v198_v37 = vld [vmem:[%s339_s3] ss:$0 sm:$0xff] }
   0xd   :  { %v199_v39 = vld [vmem:[%s340_s4] ss:$0 sm:$0xff]  ;;  %p249_p3 = por %p248_p2, %p247_p1 }
   0xe   :  { %216 = vmatpush3.bf16.msra.mxu0 %v235_v4 }
   0xf   :  { %217 = vmatprep.subr.bf16.mxu0 %v264_v1  ;;  %p250_p4 = pnand %p249_p3, %p243_p0 }
  0x12   :  { %218 = vmatpush3.bf16.msra.mxu0 %v236_v5 }
  0x13   :  { %219 = vmatprep.subr.bf16.mxu0 %v264_v1 }
  0x16   :  { %220 = vmatpush3.bf16.msra.mxu0 %v237_v6 }
  0x17   :  { %221 = vmatprep.subr.bf16.mxu0 %v264_v1 }
  0x1a   :  { %222 = vmatpush3.bf16.msra.mxu0 %v238_v7 }
  0x1b   :  { %223 = vmatprep.subr.bf16.mxu0 %v264_v1 }
  0x1e   :  { %224 = vmatpush3.bf16.msra.mxu0 %v239_v8 }
  0x21   :  { %226 = vmatmul.mubr.bf16.vlgmr.msra.gmra.mxu0 %v23_v10 }
  0xe1   :  { %v129_v12 = vpop.f32.mrf.mxu0 }
  0xe2   :  { %v130_v13 = vadd.f32 %v189_v11, %v129_v12 }
  0xe3   :  { %v227_v14 = vpop.f32.mrf.mxu0 }
  0xe4   :  { %v136_v15 = vsel %vm135_vm1, %v130_v13, 0.0 }
  0xe5   :  { %v137_v16 = vrot.slane %v136_v15, 4  ;;  %v132_v17 = vpop.f32.mrf.mxu0 }
  0xe7   :  { %v138_v18 = vadd.f32 %v137_v16, %v136_v15  ;;  %v228_v19 = vpop.f32.mrf.mxu0 }
  0xe9   :  { %v139_v20 = vrot.slane %v138_v18, 2 }
  0xeb   :  { %v140_v21 = vadd.f32 %v139_v20, %v138_v18 }
  0xed   :  { %v141_v22 = vrot.slane %v140_v21, 1 }
  0xef   :  { %v142_v23 = vadd.f32 %v141_v22, %v140_v21 }
  0xf1   :  { %v144_v24 = vmul.f32 0.5, %v142_v23 }
  0xf3   :  { %v145_v25 = vsub.f32 %v130_v13, %v144_v24 }
  0xf5   :  { %v146_v26 = vmul.f32 %v145_v25, %v145_v25 }
  0xf7   :  { %v147_v27 = vsel %vm135_vm1, %v146_v26, 0.0 }
  0xf8   :  { %v148_v28 = vrot.slane %v147_v27, 4 }
  0xfa   :  { %v149_v29 = vadd.f32 %v148_v28, %v147_v27 }
  0xfc   :  { %v150_v30 = vrot.slane %v149_v29, 2 }
  0xfe   :  { %v151_v31 = vadd.f32 %v150_v30, %v149_v29 }
 0x100   :  { %v152_v32 = vrot.slane %v151_v31, 1 }
 0x102   :  { %v153_v33 = vadd.f32 %v152_v32, %v151_v31 }
 0x104   :  { %v154_v34 = vmul.f32 0.5, %v153_v33 }
 0x106   :  { %v155_v35 = vadd.f32 1e-05, %v154_v34 }
 0x108   :  { %240 = vrsqrt.f32 %v155_v35 }
 0x115   :  { %v241_v36 = vpop.eup %240 }
 0x116   :  { %v157_v38 = vmul.f32 %v241_v36, %v145_v25 }
 0x118   :  { %v165_v40 = vmul.f32 %v198_v37, %v157_v38 }
 0x11a   :  { %v173_v41 = vadd.f32 %v199_v39, %v165_v40 }
 0x11c   :  { %174 = vst [vmem:[#allocation2] sm:$0x3] %v173_v41 }
 0x11d   :  { %253 = shalt.err (!%p250_p4)
}
 0x11e   :  { %184 = dma.vmem_to_hbm [thread:$0]  %s182_s15, 32, %s341_s5, [#allocation3]  }
 0x11f   :  { %262 = dma.done.wait [#allocation3], 32  }
 0x120   :  { %263 = vsyncadd [#allocation3], 4294967264 }
 0x121   :  { %188 = vsyncpa [#allocation3], 1 }

// kernel: encoder_cnn_forward.2
= control target key start
LH: loop header
LB: loop body
LE: loop exit
PB: predicated region body
PF: predicated region fallthrough
CT: control target
= control target key end

     0   :  { %s1571_s15 = smov 0   ;;  %s1701_s0 = inlined_call_operand.vmem [shape: bf16[2,11,8,32], index: 0, kind: input, shape index: {}]   ;;  %s1702_s1 = inlined_call_operand.vmem [shape: bf16[2,10,8,32], index: 1, kind: input, shape index: {}]   ;;  %s1703_s2 = inlined_call_operand.vmem [shape: bf16[7,32,128], index: 2, kind: input, shape index: {}]   ;;  %s1704_s3 = inlined_call_operand.vmem [shape: f32[1,128], index: 3, kind: input, shape index: {}]   ;;  %s1705_s4 = inlined_call_operand.vmem [shape: f32[2,1,128], index: 4, kind: output, shape index: {}]  }
   0x1 LB: > { %s1212_s16 = sadd.s32 4294967295, %s1544_s15   ;;  %p1216_p0 = scmp.ge.s32.totalorder %s1544_s15, 1  ;;  %s1544_s15 = sphi %s1571_s15, %s14_s15  }
   0x2   : > { %p172_p1 = scmp.lt.s32.totalorder %s1544_s15, 3 }
   0x4   : > { %p173_p2 = pnand %p1216_p0, %p172_p1 }
   0x5   : > { %p201_p3 = scmp.lt.s32.totalorder (!%p173_p2), %s1212_s16, 1 }
   0x6   : > { %176 = sbr.rel (%p173_p2) target bundleno = 296 (0x128), region = 36 }
   0xb   : > { %v1496_v0 = vld [vmem:[%s1703_s2 + $0x18] sm:$0xff]   ;;  %v1497_v1 = vld [vmem:[%s1703_s2 + $0x10] sm:$0xff]   ;;  %s1707_s16 = smov (!%p201_p3, %s1212_s16), 1  ;;  %v1502_v2 = vld [vmem:[%s1703_s2 + $0x8] sm:$0xff]   ;;  %vm272_vm0 = vcmask 261120  }
   0xc   : > { %1398 = vmatprep.subr.bf16.mxu0 %v1496_v0  ;;  %1482 = vmatprep.subr.bf16.mxu1 %v1496_v0  ;;  %s1486_s23 = smul.u32 44, %s1707_s16  ;;  %v1503_v3 = vld [vmem:[%s1703_s2 + $0x28] sm:$0xff]   ;;  %v1505_v5 = vld [vmem:[%s1703_s2 + $0x20] sm:$0xff]   ;;  %v1510_v12 = vld [vmem:[%s1703_s2 + $0x38] sm:$0xff]   ;;  %s213_s7 = scalar_lea.vmem %s1705_s4, %s1707_s16 }
   0xd   : > { %1399 = vmatpush3.bf16.msra.mxu0 %v1496_v0  ;;  %1484 = vmatpush3.bf16.msra.mxu1 %v1496_v0  ;;  %s1487_s26 = smul.u32 40, %s1707_s16  ;;  %v1504_v7 = vld [vmem:[%s1703_s2] sm:$0xff]   ;;  %v1511_v13 = vld [vmem:[%s1703_s2 + $0x48] sm:$0xff]   ;;  %v1516_v18 = vld [vmem:[%s1703_s2 + $0x30] sm:$0xff]  }
   0xe   : > { %1400 = vmatprep.subr.bf16.mxu0 %v1497_v1  ;;  %1483 = vmatprep.subr.bf16.mxu1 %v1497_v1  ;;  %s1598_s29 = scalar_lea.vmem %s1701_s0, %s1486_s23  ;;  %v1517_v19 = vld [vmem:[%s1703_s2 + $0x40] sm:$0xff]   ;;  %v1522_v24 = vld [vmem:[%s1703_s2 + $0x58] sm:$0xff]   ;;  %v1523_v25 = vld [vmem:[%s1703_s2 + $0x68] sm:$0xff]  }
   0xf   : > { %s1603_s6 = scalar_lea.vmem %s1702_s1, %s1487_s26  ;;  %v1506_v8 = vld [vmem:[%s1598_s29] sm:$0xff]   ;;  %v1509_v14 = vld [vmem:[%s1598_s29 + $0xc] sm:$0xff]   ;;  %v1513_v17 = vld [vmem:[%s1598_s29 + $0x14] sm:$0xff]  }
  0x10   : > { %v1498_v4 = vld [vmem:[%s1603_s6] sm:$0xff]   ;;  %v1499_v6 = vld [vmem:[%s1603_s6 + $0x10] sm:$0xff]   ;;  %v1500_v9 = vld [vmem:[%s1603_s6 + $0x8] sm:$0xff]  }
  0x11   : > { %1401 = vmatpush3.bf16.msra.mxu0 %v1497_v1  ;;  %1485 = vmatpush3.bf16.msra.mxu1 %v1497_v1  ;;  %v1501_v10 = vld [vmem:[%s1603_s6 + $0x18] sm:$0xff]   ;;  %v1507_v11 = vld [vmem:[%s1598_s29 + $0x4] sm:$0xff]   ;;  %v1512_v16 = vld [vmem:[%s1598_s29 + $0x10] sm:$0xff]  }
  0x12   : > { %1410 = vmatprep.subr.bf16.mxu1 %v1502_v2  ;;  %1422 = vmatprep.subr.bf16.mxu0 %v1503_v3  ;;  %v1508_v15 = vld [vmem:[%s1598_s29 + $0x8] sm:$0xff]   ;;  %v1514_v20 = vld [vmem:[%s1598_s29 + $0x18] sm:$0xff]   ;;  %v1521_v27 = vld [vmem:[%s1598_s29 + $0x10] sm:$0xff]  }
  0x13   : > { %1402 = vmatprep.mubr.msk.bf16.mxu0 %vm272_vm0, %v1498_v4  ;;  %1406 = vmatprep.mubr.msk.bf16.mxu1 %vm272_vm0, %v1499_v6  ;;  %v1515_v21 = vld [vmem:[%s1598_s29 + $0x1c] sm:$0xff]   ;;  %v1518_v22 = vld [vmem:[%s1603_s6 + $0x4] sm:$0xff]   ;;  %v1520_v26 = vld [vmem:[%s1603_s6 + $0xc] sm:$0xff]  }
  0x14   : > { %1403 = vmatmul.mubr.msk.bf16.vlgmr.msra.gmra.mxu0 %vm272_vm0, %v1500_v9  ;;  %1407 = vmatmul.mubr.msk.bf16.vlgmr.msra.gmra.mxu1 %vm272_vm0, %v1501_v10  ;;  %v1519_v23 = vld [vmem:[%s1598_s29 + $0x8] sm:$0xff]   ;;  %v1524_v28 = vld [vmem:[%s1603_s6 + $0x14] sm:$0xff]   ;;  %v1529_v31 = vld [vmem:[%s1703_s2 + $0x60] sm:$0xff]  }
  0x15   : > { %1423 = vmatpush3.bf16.msra.mxu0 %v1503_v3  ;;  %1411 = vmatpush3.bf16.msra.mxu1 %v1502_v2  ;;  %v1525_v29 = vld [vmem:[%s1598_s29 + $0x18] sm:$0xff]   ;;  %v1528_v30 = vld [vmem:[%s1703_s2 + $0x50] sm:$0xff]   ;;  %v1527_v33 = vld [vmem:[%s1598_s29 + $0x20] sm:$0xff]  }
  0x16   : > { %1424 = vmatprep.subr.bf16.mxu0 %v1505_v5  ;;  %1412 = vmatprep.subr.bf16.mxu1 %v1504_v7  ;;  %v1526_v32 = vld [vmem:[%s1603_s6 + $0x1c] sm:$0xff]   ;;  %v1531_v34 = vld [vmem:[%s1598_s29 + $0xc] sm:$0xff]   ;;  %v1533_v36 = vld [vmem:[%s1598_s29 + $0x14] sm:$0xff]  }
  0x17   : > { %1414 = vmatprep.mubr.msk.bf16.mxu1 %vm272_vm0, %v1506_v8  ;;  %1426 = vmatprep.mubr.msk.bf16.mxu0 %vm272_vm0, %v1507_v11  ;;  %v1530_v35 = vld [vmem:[%s1603_s6 + $0x8] sm:$0xff]   ;;  %v1532_v37 = vld [vmem:[%s1603_s6 + $0x10] sm:$0xff]   ;;  %v1535_v38 = vld [vmem:[%s1598_s29 + $0x1c] sm:$0xff]  }
  0x18   : > { %v1534_v39 = vld [vmem:[%s1603_s6 + $0x18] sm:$0xff]   ;;  %v1537_v40 = vld [vmem:[%s1598_s29 + $0x24] sm:$0xff]  }
  0x19   : > { %1425 = vmatpush3.bf16.msra.mxu0 %v1505_v5  ;;  %1413 = vmatpush3.bf16.msra.mxu1 %v1504_v7  ;;  %v1536_v41 = vld [vmem:[%s1603_s6 + $0x20] sm:$0xff]  }
  0x1a   : > { %1446 = vmatprep.subr.bf16.mxu0 %v1511_v13  ;;  %1434 = vmatprep.subr.bf16.mxu1 %v1510_v12 }
  0x1c   : > { %1427 = vmatmul.mubr.msk.bf16.vlgmr.msra.gmra.mxu0 %vm272_vm0, %v1509_v14  ;;  %1415 = vmatmul.mubr.msk.bf16.vlgmr.msra.gmra.mxu1 %vm272_vm0, %v1508_v15 }
  0x1d   : > { %1447 = vmatpush3.bf16.msra.mxu0 %v1511_v13  ;;  %1435 = vmatpush3.bf16.msra.mxu1 %v1510_v12 }
  0x1e   : > { %1418 = vmatprep.mubr.msk.bf16.mxu1 %vm272_vm0, %v1512_v16  ;;  %1430 = vmatprep.mubr.msk.bf16.mxu0 %vm272_vm0, %v1513_v17 }
  0x1f   : > { %1436 = vmatprep.subr.bf16.mxu1 %v1516_v18  ;;  %1448 = vmatprep.subr.bf16.mxu0 %v1517_v19 }
  0x21   : > { %1449 = vmatpush3.bf16.msra.mxu0 %v1517_v19  ;;  %1437 = vmatpush3.bf16.msra.mxu1 %v1516_v18 }
  0x22   : > { %1458 = vmatprep.subr.bf16.mxu1 %v1522_v24  ;;  %1470 = vmatprep.subr.bf16.mxu0 %v1523_v25 }
  0x24   : > { %1431 = vmatmul.mubr.msk.bf16.gmra.mxu0 %vm272_vm0, %v1515_v21  ;;  %1419 = vmatmul.mubr.msk.bf16.gmra.mxu1 %vm272_vm0, %v1514_v20 }
  0x25   : > { %1450 = vmatprep.mubr.msk.bf16.mxu0 %vm272_vm0, %v1519_v23  ;;  %1438 = vmatprep.mubr.msk.bf16.mxu1 %vm272_vm0, %v1518_v22 }
  0x2c   : > { %1451 = vmatmul.mubr.msk.bf16.vlgmr.msra.gmra.mxu0 %vm272_vm0, %v1521_v27  ;;  %1439 = vmatmul.mubr.msk.bf16.vlgmr.msra.gmra.mxu1 %vm272_vm0, %v1520_v26 }
  0x2d   : > { %1471 = vmatpush3.bf16.msra.mxu0 %v1523_v25  ;;  %1459 = vmatpush3.bf16.msra.mxu1 %v1522_v24 }
  0x2e   : > { %1442 = vmatprep.mubr.msk.bf16.mxu1 %vm272_vm0, %v1524_v28  ;;  %1454 = vmatprep.mubr.msk.bf16.mxu0 %vm272_vm0, %v1525_v29 }
  0x2f   : > { %1460 = vmatprep.subr.bf16.mxu1 %v1528_v30  ;;  %1472 = vmatprep.subr.bf16.mxu0 %v1529_v31 }
  0x31   : > { %1473 = vmatpush3.bf16.msra.mxu0 %v1529_v31  ;;  %1461 = vmatpush3.bf16.msra.mxu1 %v1528_v30 }
  0x34   : > { %1455 = vmatmul.mubr.msk.bf16.gmra.mxu0 %vm272_vm0, %v1527_v33  ;;  %1443 = vmatmul.mubr.msk.bf16.gmra.mxu1 %vm272_vm0, %v1526_v32 }
  0x35   : > { %1474 = vmatprep.mubr.msk.bf16.mxu0 %vm272_vm0, %v1531_v34  ;;  %1462 = vmatprep.mubr.msk.bf16.mxu1 %vm272_vm0, %v1530_v35 }
  0x3c   : > { %1475 = vmatmul.mubr.msk.bf16.vlgmr.msra.gmra.mxu0 %vm272_vm0, %v1533_v36  ;;  %1463 = vmatmul.mubr.msk.bf16.vlgmr.msra.gmra.mxu1 %vm272_vm0, %v1532_v37 }
  0x3d   : > { %1478 = vmatprep.mubr.msk.bf16.mxu0 %vm272_vm0, %v1535_v38  ;;  %1466 = vmatprep.mubr.msk.bf16.mxu1 %vm272_vm0, %v1534_v39 }
  0x44   : > { %1479 = vmatmul.mubr.msk.bf16.gmra.mxu0 %vm272_vm0, %v1537_v40  ;;  %1467 = vmatmul.mubr.msk.bf16.gmra.mxu1 %vm272_vm0, %v1536_v41 }
  0xd4   : > { %v1404_v42 = vpop.f32.mrf.mxu0  ;;  %v1408_v43 = vpop.f32.mrf.mxu1 }
  0xd6   : > { %v319_v44 = vpop.f32.mrf.mxu0  ;;  %v335_v45 = vpop.f32.mrf.mxu1 }
  0xd8   : > { %v1405_v46 = vpop.f32.mrf.mxu0  ;;  %v1409_v47 = vpop.f32.mrf.mxu1 }
  0xda   : > { %v322_v48 = vpop.f32.mrf.mxu0  ;;  %v338_v49 = vpop.f32.mrf.mxu1 }
  0xdc   : > { %v1428_v50 = vpop.f32.mrf.mxu0  ;;  %v1416_v51 = vpop.f32.mrf.mxu1 }
  0xdd   : > { %v437_v10 = vadd.f32 %v1416_v51, %v1404_v42 }
  0xde   : > { %v551_v52 = vpop.f32.mrf.mxu0  ;;  %v428_v53 = vpop.f32.mrf.mxu1 }
  0xdf   : > { %v429_v11 = vadd.f32 %v428_v53, %v319_v44  ;;  %v584_v17 = vadd.f32 %v1428_v50, %v437_v10 }
  0xe0   : > { %v1429_v54 = vpop.f32.mrf.mxu0  ;;  %v1417_v55 = vpop.f32.mrf.mxu1 }
  0xe1   : > { %v440_v14 = vadd.f32 %v1417_v55, %v1405_v46  ;;  %v582_v18 = vadd.f32 %v551_v52, %v429_v11 }
  0xe2   : > { %v554_v56 = vpop.f32.mrf.mxu0  ;;  %v431_v57 = vpop.f32.mrf.mxu1 }
  0xe3   : > { %v432_v19 = vadd.f32 %v431_v57, %v322_v48  ;;  %v585_v22 = vadd.f32 %v1429_v54, %v440_v14 }
  0xe4   : > { %v1432_v58 = vpop.f32.mrf.mxu0  ;;  %v1420_v59 = vpop.f32.mrf.mxu1 }
  0xe5   : > { %v583_v27 = vadd.f32 %v554_v56, %v432_v19  ;;  %v453_v31 = vadd.f32 %v1420_v59, %v1408_v43 }
  0xe6   : > { %v567_v60 = vpop.f32.mrf.mxu0  ;;  %v444_v61 = vpop.f32.mrf.mxu1 }
  0xe7   : > { %v445_v28 = vadd.f32 %v444_v61, %v335_v45  ;;  %v588_v46 = vadd.f32 %v1432_v58, %v453_v31 }
  0xe8   : > { %v1433_v62 = vpop.f32.mrf.mxu0  ;;  %v1421_v63 = vpop.f32.mrf.mxu1 }
  0xe9   : > { %v456_v37 = vadd.f32 %v1421_v63, %v1409_v47  ;;  %v586_v39 = vadd.f32 %v567_v60, %v445_v28  ;;  %v1353_v63 = vld [vmem:[%s1704_s3] ss:$0 sm:$0xff] }
  0xea   : > { %v570_v0 = vpop.f32.mrf.mxu0  ;;  %v447_v1 = vpop.f32.mrf.mxu1 }
  0xeb   : > { %v448_v48 = vadd.f32 %v447_v1, %v338_v49  ;;  %v589_v54 = vadd.f32 %v1433_v62, %v456_v37 }
  0xec   : > { %v1452_v2 = vpop.f32.mrf.mxu0  ;;  %v1440_v3 = vpop.f32.mrf.mxu1 }
  0xed   : > { %v715_v23 = vadd.f32 %v1440_v3, %v584_v17  ;;  %v587_v61 = vadd.f32 %v570_v0, %v448_v48 }
  0xee   : > { %v813_v4 = vpop.f32.mrf.mxu0  ;;  %v682_v5 = vpop.f32.mrf.mxu1 }
  0xef   : > { %v713_v24 = vadd.f32 %v682_v5, %v582_v18  ;;  %v846_v33 = vadd.f32 %v1452_v2, %v715_v23 }
  0xf0   : > { %v1453_v6 = vpop.f32.mrf.mxu0  ;;  %v1441_v7 = vpop.f32.mrf.mxu1 }
  0xf1   : > { %v716_v29 = vadd.f32 %v1441_v7, %v585_v22  ;;  %v844_v34 = vadd.f32 %v813_v4, %v713_v24 }
  0xf2   : > { %v816_v8 = vpop.f32.mrf.mxu0  ;;  %v685_v9 = vpop.f32.mrf.mxu1 }
  0xf3   : > { %v714_v35 = vadd.f32 %v685_v9, %v583_v27  ;;  %v847_v40 = vadd.f32 %v1453_v6, %v716_v29 }
  0xf4   : > { %v1456_v12 = vpop.f32.mrf.mxu0  ;;  %v1444_v13 = vpop.f32.mrf.mxu1 }
  0xf5   : > { %v845_v51 = vadd.f32 %v816_v8, %v714_v35  ;;  %v719_v55 = vadd.f32 %v1444_v13, %v588_v46 }
  0xf6   : > { %v829_v15 = vpop.f32.mrf.mxu0  ;;  %v698_v16 = vpop.f32.mrf.mxu1 }
  0xf7   : > { %v717_v45 = vadd.f32 %v698_v16, %v586_v39  ;;  %v850_v5 = vadd.f32 %v1456_v12, %v719_v55 }
  0xf8   : > { %v1457_v20 = vpop.f32.mrf.mxu0  ;;  %v1445_v21 = vpop.f32.mrf.mxu1 }
  0xf9   : > { %v720_v60 = vadd.f32 %v1445_v21, %v589_v54  ;;  %v848_v49 = vadd.f32 %v829_v15, %v717_v45 }
  0xfa   : > { %v832_v25 = vpop.f32.mrf.mxu0  ;;  %v701_v26 = vpop.f32.mrf.mxu1 }
  0xfb   : > { %v718_v6 = vadd.f32 %v701_v26, %v587_v61  ;;  %v851_v10 = vadd.f32 %v1457_v20, %v720_v60 }
  0xfc   : > { %v1476_v30 = vpop.f32.mrf.mxu0  ;;  %v1464_v32 = vpop.f32.mrf.mxu1 }
  0xfd   : > { %v977_v41 = vadd.f32 %v1464_v32, %v846_v33  ;;  %v849_v19 = vadd.f32 %v832_v25, %v718_v6 }
  0xfe   : > { %v1075_v36 = vpop.f32.mrf.mxu0  ;;  %v944_v38 = vpop.f32.mrf.mxu1 }
  0xff   : > { %v975_v42 = vadd.f32 %v944_v38, %v844_v34  ;;  %v1108_v57 = vadd.f32 %v1476_v30, %v977_v41 }
 0x100   : > { %v1477_v44 = vpop.f32.mrf.mxu0  ;;  %v1465_v50 = vpop.f32.mrf.mxu1 }
 0x101   : > { %v1106_v52 = vadd.f32 %v1075_v36, %v975_v42  ;;  %v978_v53 = vadd.f32 %v1465_v50, %v847_v40  ;;  %v1123_v7 = vadd.f32 %v1353_v63, %v1108_v57 }
 0x102   : > { %v1078_v43 = vpop.f32.mrf.mxu0  ;;  %v947_v56 = vpop.f32.mrf.mxu1 }
 0x103   : > { %v976_v59 = vadd.f32 %v947_v56, %v845_v51  ;;  %v1121_v1 = vadd.f32 %v1353_v63, %v1106_v52  ;;  %v1109_v2 = vadd.f32 %v1477_v44, %v978_v53  ;;  %v1131_v22 = vmax.f32 %v1123_v7, 0.0 }
 0x104   : > { %v1480_v47 = vpop.f32.mrf.mxu0  ;;  %v1468_v58 = vpop.f32.mrf.mxu1 }
 0x105   : > { %v1107_v3 = vadd.f32 %v1078_v43, %v976_v59  ;;  %v981_v11 = vadd.f32 %v1468_v58, %v850_v5  ;;  %v1129_v13 = vmax.f32 %v1121_v1, 0.0  ;;  %v1124_v14 = vadd.f32 %v1353_v63, %v1109_v2 }
 0x106   : > { %v1091_v4 = vpop.f32.mrf.mxu0  ;;  %v960_v62 = vpop.f32.mrf.mxu1 }
 0x107   : > { %v1122_v8 = vadd.f32 %v1353_v63, %v1107_v3  ;;  %v979_v9 = vadd.f32 %v960_v62, %v848_v49  ;;  %v1112_v12 = vadd.f32 %v1480_v47, %v981_v11  ;;  %v1132_v27 = vmax.f32 %v1124_v14, 0.0 }
 0x108   : > { %v1469_v0 = vpop.f32.mrf.mxu1  ;;  %v1481_v18 = vpop.f32.mrf.mxu0 }
 0x109   : > { %v1130_v16 = vmax.f32 %v1122_v8, 0.0  ;;  %v1110_v17 = vadd.f32 %v1091_v4, %v979_v9  ;;  %v982_v15 = vadd.f32 %v1469_v0, %v851_v10  ;;  %v1127_v33 = vadd.f32 %v1353_v63, %v1112_v12 }
 0x10a   : > { %v963_v21 = vpop.f32.mrf.mxu1  ;;  %v1094_v29 = vpop.f32.mrf.mxu0 }
 0x10b   : > { %v1137_v23 = vadd.f32 %v1130_v16, %v1129_v13  ;;  %v1125_v24 = vadd.f32 %v1353_v63, %v1110_v17  ;;  %v980_v26 = vadd.f32 %v963_v21, %v849_v19  ;;  %v1113_v30 = vadd.f32 %v1481_v18, %v982_v15 }
 0x10c   : > { %v1135_v37 = vmax.f32 %v1127_v33, 0.0 }
 0x10d   : > { %v1138_v28 = vadd.f32 %v1137_v23, %v1131_v22  ;;  %v1111_v20 = vadd.f32 %v1094_v29, %v980_v26  ;;  %v1133_v31 = vmax.f32 %v1125_v24, 0.0  ;;  %v1128_v36 = vadd.f32 %v1353_v63, %v1113_v30 }
 0x10f   : > { %v1139_v32 = vadd.f32 %v1138_v28, %v1132_v27  ;;  %v1126_v34 = vadd.f32 %v1353_v63, %v1111_v20  ;;  %v1136_v39 = vmax.f32 %v1128_v36, 0.0 }
 0x111   : > { %v1140_v35 = vadd.f32 %v1139_v32, %v1133_v31  ;;  %v1134_v25 = vmax.f32 %v1126_v34, 0.0 }
 0x113   : > { %v1141_v38 = vadd.f32 %v1140_v35, %v1134_v25 }
 0x115   : > { %v1142_v40 = vadd.f32 %v1141_v38, %v1135_v37 }
 0x117   : > { %v1143_v41 = vadd.f32 %v1142_v40, %v1136_v39 }
 0x119   : > { %v1144_v42 = vrot.slane %v1143_v41, 4 }
 0x11b   : > { %v1145_v44 = vadd.f32 %v1144_v42, %v1143_v41 }
 0x11d   : > { %v1146_v46 = vrot.slane %v1145_v44, 2 }
 0x11f   : > { %v1147_v48 = vadd.f32 %v1146_v46, %v1145_v44 }
 0x121   : > { %v1148_v50 = vrot.slane %v1147_v48, 1 }
 0x123   : > { %v1149_v51 = vadd.f32 %v1148_v50, %v1147_v48 }
 0x125   : > { %v1151_v45 = vmul.f32 0.015625, %v1149_v51 }
 0x127   : > { %1152 = vst [vmem:[%s213_s7] sm:$0x1] %v1151_v45 }
 0x128 PF: > { %s14_s15 = sadd.s32 1, %s1544_s15  }
 0x129   : > { %p11_p4 = scmp.ge.s32.totalorder %s14_s15, 4  }
 0x12b   :  { %13 = sbr.rel (!%p11_p4) target bundleno = 1 (0x1), region = 80 }

</bundles_post_ra>
